<compile_context>
chip_gen: v5e
topology: v5e:2x2
jax: 0.10.0
libtpu: 0.0.40
codegen_flags: <defaults>
</compile_context>

<pallas_src>
import jax
import jax.numpy as jnp
from jax.experimental import pallas as pl
from jax.experimental.pallas import tpu as pltpu


def _round_up(x, m):
    return ((x + m - 1) // m) * m


# ---------------------------------------------------------------------------
# Stage 1: PersonNet (depth=1, sigmoid) -> raw z (pre-BatchNorm), tiled over N.
# ---------------------------------------------------------------------------
def personnet_kernel(x_ref, w1_ref, b1_ref, wl_ref, bl_ref, z_ref):
    h = jnp.dot(x_ref[...], w1_ref[...],
                preferred_element_type=jnp.float32)            # [tile_n, H]
    h = jax.nn.sigmoid(h + b1_ref[...])
    # Linear(H, 1) as VPU mul + lane (XLU) reduce; wl_ref is [1, H].
    z = jnp.sum(h * wl_ref[...], axis=-1, keepdims=True) + bl_ref[...]
    z_ref[...] = jnp.tanh(z) * 3.0                             # [tile_n, 1]


# ---------------------------------------------------------------------------
# Stage 2: p = sigmoid(a'*z_raw - c') with BN folded into a'/c' and the
# single-transcendental form 0.5*tanh(0.5*t)+0.5 (0.5 pre-folded into a'/c').
# ---------------------------------------------------------------------------
def combine_kernel(z_ref, ah_ref, ch_ref, out_ref):
    t_half = ah_ref[...] * z_ref[...] - ch_ref[...]            # [tile_n, tile_m]
    out_ref[...] = (0.5 * jnp.tanh(t_half) + 0.5).astype(out_ref.dtype)


def cen_qb_forward(x_person, x_item, w1, b1, wl, bl, a, b,
                   tile_n1=1024, tile_n=512, tile_m=2048,
                   out_dtype=jnp.float32):
    """Forward pass of CEN_QB (depth=1, activation='sigmoid')."""
    del x_item  # unused in the reference forward (only supplies a device)

    x_person = x_person.astype(jnp.float32)
    N, K = x_person.shape
    w1f = w1.astype(jnp.float32)
    H = w1f.shape[1]
    b1r = b1.reshape(1, -1).astype(jnp.float32)                 # [1, H]
    wl_row = wl.reshape(1, -1).astype(jnp.float32)              # [1, H]
    blr = bl.reshape(1, 1).astype(jnp.float32)                  # [1, 1]
    a2 = a.reshape(1, -1).astype(jnp.float32)                   # [1, M]
    b2 = b.reshape(1, -1).astype(jnp.float32)                   # [1, M]
    M = a2.shape[1]

    # ---- Stage 1: raw z over N, tiled + pipelined -------------------------
    vmem_row_cap = max(8, ((4 << 20) // max(K * 4, 1)) // 8 * 8)
    tile_n1 = max(8, min(tile_n1, _round_up(N, 8), vmem_row_cap))
    z_raw = pl.pallas_call(
        personnet_kernel,
        out_shape=jax.ShapeDtypeStruct((N, 1), jnp.float32),
        grid=(pl.cdiv(N, tile_n1),),
        in_specs=[
            pl.BlockSpec((tile_n1, K), lambda i: (i, 0)),
            pl.BlockSpec((K, H), lambda i: (0, 0)),      # same block -> DMA reused
            pl.BlockSpec((1, H), lambda i: (0, 0)),
            pl.BlockSpec((1, H), lambda i: (0, 0)),
            pl.BlockSpec((1, 1), lambda i: (0, 0)),
        ],
        out_specs=pl.BlockSpec((tile_n1, 1), lambda i: (i, 0)),
        compiler_params=pltpu.CompilerParams(
            dimension_semantics=("parallel",)),
    )(x_person, w1f, b1r, wl_row, blr)

    # ---- Fold BatchNorm1d(1, eps=0, affine=False, training) into a rescale -
    # (tiny [N,1] reduction done in plain XLA; negligible traffic)
    mean = jnp.mean(z_raw)
    var = jnp.mean((z_raw - mean) ** 2)          # biased variance, eps = 0
    inv_std = jax.lax.rsqrt(var)
    #   a*(z_bn - b) = (a*inv_std)*z_raw - a*(b + mean*inv_std)
    # plus the 0.5 of sigmoid(t) = 0.5*tanh(0.5*t) + 0.5 folded in:
    a_half = (0.5 * inv_std) * a2                               # [1, M]
    c_half = 0.5 * a2 * (b2 + mean * inv_std)                   # [1, M]

    # ---- Stage 2: lane-dense tiled broadcast-sigmoid, no post-slice --------
    out_itemsize = jnp.dtype(out_dtype).itemsize
    if M % 128 == 0:
        tile_m = min(tile_m, M)          # multiple of 128, lane-dense
    else:
        tile_m = M                       # full-width block (== array dim: legal)
    max_rows = max(8, ((4 << 20) // max(tile_m * out_itemsize, 1)) // 8 * 8)
    tile_n = max(8, min(tile_n, max_rows, _round_up(N, 8)))

    # Pad only the tiny inputs so input blocks never read unspecified data;
    # the big (N, M) output is written un-padded (boundary stores are masked).
    m_pad = _round_up(M, tile_m)
    n_pad = _round_up(N, tile_n)
    if m_pad != M:
        a_half = jnp.pad(a_half, ((0, 0), (0, m_pad - M)))
        c_half = jnp.pad(c_half, ((0, 0), (0, m_pad - M)))
    z_in = z_raw if n_pad == N else jnp.pad(z_raw, ((0, n_pad - N), (0, 0)))

    # Grid: (M-tiles, N-tiles) with N innermost so the [1,tile_m] vectors keep
    # the same block index across the inner loop (their DMAs are skipped).
    grid2 = (m_pad // tile_m, n_pad // tile_n)

    vmem_bytes = int(2 * tile_n * tile_m * out_itemsize          # out dbl-buffer
                     + 2 * (tile_n * 4 + 2 * tile_m * 4)         # small inputs
                     + (4 << 20))                                # headroom

    p = pl.pallas_call(
        combine_kernel,
        out_shape=jax.ShapeDtypeStruct((N, M), out_dtype),
        grid=grid2,
        in_specs=[
            pl.BlockSpec((tile_n, 1), lambda j, i: (i, 0)),
            pl.BlockSpec((1, tile_m), lambda j, i: (0, j)),
            pl.BlockSpec((1, tile_m), lambda j, i: (0, j)),
        ],
        out_specs=pl.BlockSpec((tile_n, tile_m), lambda j, i: (i, j)),
        compiler_params=pltpu.CompilerParams(
            dimension_semantics=("parallel", "parallel"),
            vmem_limit_bytes=vmem_bytes),
    )(z_in, a_half, c_half)
    return p


if __name__ == "__main__":
    key = jax.random.PRNGKey(0)
    kx, kxi, kw1, kb1, kwl, kbl, ka, kb = jax.random.split(key, 8)

    # small shapes consistent with the module
    N = 8          # batch
    K = 16         # inp_size_person_net
    H = 32         # hidden_dim (100 in torch default; small synthetic value)
    M = 8          # number of items in ItemNet CSVs (a, b vectors)

    x_person = jax.random.normal(kx, (N, K), dtype=jnp.float32)
    x_item = jax.random.normal(kxi, (N, M), dtype=jnp.float32)  # unused, as in torch

    # deterministic synthetic parameters (torch-Linear-like small uniform init)
    lim1 = 1.0 / jnp.sqrt(jnp.float32(K))
    w1 = jax.random.uniform(kw1, (K, H), jnp.float32, -lim1, lim1)
    b1 = jax.random.uniform(kb1, (1, H), jnp.float32, -lim1, lim1)
    liml = 1.0 / jnp.sqrt(jnp.float32(H))
    wl = jax.random.uniform(kwl, (H, 1), jnp.float32, -liml, liml)
    bl = jax.random.uniform(kbl, (1, 1), jnp.float32, -liml, liml)

    # ItemNet "loaded CSV" data -> synthetic deterministic vectors, reshape(1,-1)
    a = jnp.abs(jax.random.normal(ka, (1, M), dtype=jnp.float32)) + 0.5   # discrimination
    b = jax.random.normal(kb, (1, M), dtype=jnp.float32)                  # difficulty

    p = cen_qb_forward(x_person, x_item, w1, b1, wl, bl, a, b)
    p = jax.block_until_ready(p)

    # pure-JAX reference check
    h_ref = jax.nn.sigmoid(x_person @ w1 + b1)
    z_ref = jnp.tanh(h_ref @ wl + bl) * 3.0
    mean = z_ref.mean(0, keepdims=True)
    var = ((z_ref - mean) ** 2).mean(0, keepdims=True)   # biased var, eps=0
    z_ref = (z_ref - mean) / jnp.sqrt(var)
    p_ref = 1.0 / (1.0 + jnp.exp(-(a.reshape(1, -1)) * (z_ref - b.reshape(1, -1))))

    assert p.shape == (N, M)
    assert jnp.allclose(p, p_ref, atol=1e-4, rtol=1e-4), \
        float(jnp.max(jnp.abs(p - p_ref)))

    print("KERNEL_OK")
</pallas_src>

<mosaic_0001>
module attributes {stable_mosaic.version = 11 : i64} {
  func.func @personnet_kernel(%arg0: i32, %arg1: memref<8x16xf32, #tpu.memory_space<vmem>>, %arg2: memref<16x32xf32, #tpu.memory_space<vmem>>, %arg3: memref<1x32xf32, #tpu.memory_space<vmem>>, %arg4: memref<1x32xf32, #tpu.memory_space<vmem>>, %arg5: memref<1x1xf32, #tpu.memory_space<vmem>>, %arg6: memref<8x1xf32, #tpu.memory_space<vmem>>) attributes {dimension_semantics = [#tpu.dimension_semantics<parallel>], iteration_bounds = array<i64: 1>, scalar_prefetch = 0 : i64, scratch_operands = 0 : i64, tpu.core_type = #tpu.core_type<tc>, window_params = [{transform_indices = @transform_0, window_bounds = array<i64: 8, 16>}, {pipeline_mode = #tpu.pipeline_mode<synchronous>, transform_indices = @transform_1, window_bounds = array<i64: 16, 32>}, {pipeline_mode = #tpu.pipeline_mode<synchronous>, transform_indices = @transform_2, window_bounds = array<i64: 1, 32>}, {pipeline_mode = #tpu.pipeline_mode<synchronous>, transform_indices = @transform_3, window_bounds = array<i64: 1, 32>}, {pipeline_mode = #tpu.pipeline_mode<synchronous>, transform_indices = @transform_4, window_bounds = array<i64: 1, 1>}, {transform_indices = @transform_5, window_bounds = array<i64: 8, 1>}]} {
    %c0 = arith.constant 0 : index
    %c0_0 = arith.constant 0 : index
    %0 = vector.load %arg1[%c0, %c0_0] : memref<8x16xf32, #tpu.memory_space<vmem>>, vector<8x16xf32>
    %c0_1 = arith.constant 0 : index
    %c0_2 = arith.constant 0 : index
    %1 = vector.load %arg2[%c0_1, %c0_2] : memref<16x32xf32, #tpu.memory_space<vmem>>, vector<16x32xf32>
    %cst = arith.constant dense<0.000000e+00> : vector<8x32xf32>
    %2 = tpu.matmul %0, %1, %cst {dimension_numbers = #tpu.dot_dimension_numbers<[1], [0], [0], [1], [0, 0, 1, 1], [], []>} : vector<8x16xf32>, vector<16x32xf32>, vector<8x32xf32> -> vector<8x32xf32>
    %c0_3 = arith.constant 0 : index
    %c0_4 = arith.constant 0 : index
    %3 = vector.load %arg3[%c0_3, %c0_4] : memref<1x32xf32, #tpu.memory_space<vmem>>, vector<1x32xf32>
    %4 = vector.broadcast %3 : vector<1x32xf32> to vector<8x32xf32>
    %5 = arith.addf %2, %4 : vector<8x32xf32>
    %6 = arith.negf %5 : vector<8x32xf32>
    %7 = math.exp %6 : vector<8x32xf32>
    %cst_5 = arith.constant 1.000000e+00 : f32
    %8 = vector.broadcast %cst_5 : f32 to vector<8x32xf32>
    %9 = arith.addf %8, %7 : vector<8x32xf32>
    %10 = arith.divf %8, %9 : vector<8x32xf32>
    %c0_6 = arith.constant 0 : index
    %c0_7 = arith.constant 0 : index
    %11 = vector.load %arg4[%c0_6, %c0_7] : memref<1x32xf32, #tpu.memory_space<vmem>>, vector<1x32xf32>
    %12 = vector.broadcast %11 : vector<1x32xf32> to vector<8x32xf32>
    %13 = arith.mulf %10, %12 : vector<8x32xf32>
    %cst_8 = arith.constant dense<0.000000e+00> : vector<8xf32>
    %14 = vector.multi_reduction <add>, %13, %cst_8 [1] : vector<8x32xf32> to vector<8xf32>
    %15 = vector.shape_cast %14 : vector<8xf32> to vector<8x1xf32>
    %c0_9 = arith.constant 0 : index
    %c0_10 = arith.constant 0 : index
    %16 = vector.load %arg5[%c0_9, %c0_10] : memref<1x1xf32, #tpu.memory_space<vmem>>, vector<1x1xf32>
    %17 = vector.broadcast %16 : vector<1x1xf32> to vector<8x1xf32>
    %18 = arith.addf %15, %17 : vector<8x1xf32>
    %19 = math.tanh %18 : vector<8x1xf32>
    %cst_11 = arith.constant 3.000000e+00 : f32
    %20 = vector.broadcast %cst_11 : f32 to vector<8x1xf32>
    %21 = arith.mulf %19, %20 : vector<8x1xf32>
    %c0_12 = arith.constant 0 : index
    %c0_13 = arith.constant 0 : index
    %22 = vector.load %arg6[%c0_12, %c0_13] : memref<8x1xf32, #tpu.memory_space<vmem>>, vector<8x1xf32>
    tpu.vector_store %arg6[%c0_12, %c0_13], %21 {strides = array<i32>} : memref<8x1xf32, #tpu.memory_space<vmem>>, vector<8x1xf32>,
    return
  }
  func.func @transform_0(%arg0: i32) -> (i32, i32) {
    %c0_i32 = arith.constant 0 : i32
    %c0_i32_0 = arith.constant 0 : i32
    return %arg0, %c0_i32 : i32, i32
  }
  func.func @transform_1(%arg0: i32) -> (i32, i32) {
    %c0_i32 = arith.constant 0 : i32
    %c0_i32_0 = arith.constant 0 : i32
    %c0_i32_1 = arith.constant 0 : i32
    return %c0_i32, %c0_i32_0 : i32, i32
  }
  func.func @transform_2(%arg0: i32) -> (i32, i32) {
    %c0_i32 = arith.constant 0 : i32
    %c0_i32_0 = arith.constant 0 : i32
    %c0_i32_1 = arith.constant 0 : i32
    return %c0_i32, %c0_i32_0 : i32, i32
  }
  func.func @transform_3(%arg0: i32) -> (i32, i32) {
    %c0_i32 = arith.constant 0 : i32
    %c0_i32_0 = arith.constant 0 : i32
    %c0_i32_1 = arith.constant 0 : i32
    return %c0_i32, %c0_i32_0 : i32, i32
  }
  func.func @transform_4(%arg0: i32) -> (i32, i32) {
    %c0_i32 = arith.constant 0 : i32
    %c0_i32_0 = arith.constant 0 : i32
    %c0_i32_1 = arith.constant 0 : i32
    return %c0_i32, %c0_i32_0 : i32, i32
  }
  func.func @transform_5(%arg0: i32) -> (i32, i32) {
    %c0_i32 = arith.constant 0 : i32
    %c0_i32_0 = arith.constant 0 : i32
    return %arg0, %c0_i32 : i32, i32
  }
}

</mosaic_0001>

<bundles_post_ra>
// kernel: tpu_custom_call.1
= control target key start
LH: loop header
LB: loop body
LE: loop exit
PB: predicated region body
PF: predicated region fallthrough
CT: control target
= control target key end

     0   :  { %s245_s0 = inlined_call_operand.hbm [shape: f32[8,16], index: 0, kind: input, shape index: {}]   ;;  %s246_s1 = inlined_call_operand.hbm [shape: f32[16,32], index: 1, kind: input, shape index: {}]   ;;  %s247_s2 = inlined_call_operand.vmem [shape: f32[1,32], index: 2, kind: input, shape index: {}]   ;;  %s248_s3 = inlined_call_operand.vmem [shape: f32[1,32], index: 3, kind: input, shape index: {}]   ;;  %s249_s4 = inlined_call_operand.<no memory space> [shape: f32[1,1], index: 4, kind: input, shape index: {}]   ;;  %s250_s5 = inlined_call_operand.vmem [shape: f32[8,1], index: 5, kind: output, shape index: {}]  }
   0x1   :  { %v10_v0 = vstv %s249_s4 }
   0x2   :  { %11 = vst [vmem:[#allocation2] sm:$0x1] %v10_v0 }
   0x3   :  { %12 = vsyncpa [#allocation4], 0  ;;  %s19_s22 = sshll.u32 %s245_s0, 4  ;;  %s20_s22 = int_to_ptr.hbm [resolvable:$true] %s19_s22 }
   0x4   :  { %13 = vsyncpa [#allocation6], 0  ;;  %s193_s23 = smov [#allocation3]   ;;  %s29_s27 = sshll.u32 %s246_s1, 4  ;;  %s30_s27 = int_to_ptr.hbm [resolvable:$true] %s29_s27 }
   0x5   :  { %s21_s24 = sshll.u32 %s193_s23, 4  ;;  %s194_s28 = smov [#allocation5]   ;;  %s22_s24 = int_to_ptr.vmem [resolvable:$true] %s21_s24 }
   0x6   :  { %24 = dma.hbm_to_vmem [thread:$0]  %s20_s22, 128, %s22_s24, [#allocation4]  }
   0x7   :  { %s31_s29 = sshll.u32 %s194_s28, 4  ;;  %s195_s4 = smov 128   ;;  %s32_s29 = int_to_ptr.vmem [resolvable:$true] %s31_s29 }
   0x8   :  { %s196_s30 = smov 8  }
   0x9   :  { %37 = dma.hbm_to_vmem [thread:$0]  %s30_s27, 256, %s32_s29, [#allocation6], %s195_s4, %s195_s4, %s196_s30  }
   0xa   :  { %189 = dma.done.wait [#allocation4], 128  }
   0xb   :  { %190 = vsyncadd [#allocation4], 4294967168 }
   0xc   :  { %191 = dma.done.wait [#allocation6], 256  }
   0xd   :  { %192 = vsyncadd [#allocation6], 4294967040  ;;  %v54_v1 = vld [vmem:[#allocation5 + $0x8] sm:$0xff]  ;;  %v53_v2 = vld [vmem:[#allocation5] sm:$0xff]  ;;  %vm59_vm0 = vcmask 130048   ;;  %vm107_vm5 = vcmask 261120  }
   0xe   :  { %77 = vmatpush.msra.mxu0 %v54_v1  ;;  %v52_v3 = vld [vmem:[#allocation3] sm:$0xff]  ;;  %v132_v4 = vld [vmem:[%s247_s2] ss:$0 sm:$0xff]  ;;  %vm118_vm6 = vcmask 7168  }
   0xf   :  { %v133_v17 = vld [vmem:[%s248_s3] ss:$0 sm:$0xff] }
  0x10   :  { %78 = vmatpush.msra.mxu0 %v53_v2  ;;  %v134_v23 = vld [vmem:[#allocation2] ss:$0 sm:$0xff] }
  0x11   :  { %126 = vmatmul.msk.f32.vlgmr.msra.gmra.mxu0 %vm59_vm0, %v52_v3 }
  0x8e   :  { %v80_v5 = vpop.f32.mrf.mxu0 }
  0x8f   :  { %v81_v6 = vadd.f32 %v132_v4, %v80_v5 }
  0x91   :  { %v127_v7 = vmul.f32 -1.442695, %v81_v6 }
  0x93   :  { %135 = vpow2.f32 %v127_v7 }
  0x99   :  { %v136_v8 = vpop.eup %135 }
  0x9a   :  { %v86_v9 = vadd.f32 1.0, %v136_v8 }
  0x9c   :  { %137 = vrcp.f32 %v86_v9  ;;  %v98_v13 = vand.u32 2147483648, %v86_v9  ;;  %v96_v15 = vand.u32 2147483647, %v86_v9  ;;  %vm92_vm2 = vweird.f32 %v86_v9 }
  0x9e   :  { %v99_v18 = vor.u32 1.1754944e-38, %v98_v13  ;;  %vm97_vm4 = vcmp.eq.f32.partialorder %v96_v15, 8.507059e+37 }
  0xa2   :  { %v138_v10 = vpop.eup %137 }
  0xa3   :  { %v88_v11 = vmul.f32 %v138_v10, %v86_v9  ;;  %vm93_vm1 = vweird.f32 %v138_v10 }
  0xa4   :  { %vm94_vm3 = vmor %vm92_vm2, %vm93_vm1 }
  0xa5   :  { %v89_v12 = vsub.f32 1.0, %v88_v11 }
  0xa7   :  { %v90_v14 = vmul.f32 %v138_v10, %v89_v12 }
  0xa9   :  { %v91_v16 = vadd.f32 %v138_v10, %v90_v14 }
  0xab   :  { %v95_v19 = vsel %vm94_vm3, %v138_v10, %v91_v16 }
  0xac   :  { %v100_v20 = vsel %vm97_vm4, %v99_v18, %v95_v19 }
  0xad   :  { %v106_v21 = vmul.f32 %v133_v17, %v100_v20 }
  0xaf   :  { %v108_v22 = vsel %vm107_vm5, %v106_v21, 0.0 }
  0xb0   :  { %109 = vadd.xlane.f32.xlu0 %v108_v22 }
 0x123   :  { %v110_v24 = vpop.xlane.xlu0 %109 }
 0x124   :  { %v115_v25 = vadd.f32 %v134_v23, %v110_v24 }
 0x126   :  { %139 = vtanh.f32 %v115_v25 }
 0x12c   :  { %v140_v26 = vpop.eup %139 }
 0x12d   :  { %v117_v27 = vmul.f32 3.0, %v140_v26 }
 0x12f   :  { %119 = vst.msk [vmem:[%s250_s5] sm:$0xff] %vm118_vm6, %v117_v27 }
 0x130   :  { %124 = vsyncpa [#allocation4], 1 }
 0x131   :  { %125 = vsyncpa [#allocation6], 1 }

</bundles_post_ra>
